<compile_context>
chip_gen: v7x
topology: tpu7x:2x2x1
jax: 0.10.0
libtpu: 0.0.40
codegen_flags: <defaults>
</compile_context>

<pallas_src>
import jax
import jax.numpy as jnp
from jax.experimental import pallas as pl
from jax.experimental.pallas import tpu as pltpu

_INV_SQRT2 = 0.7071067811865476

# Abramowitz & Stegun 7.1.26:  erf(z) = 1 - P(t)*exp(-z^2),  t = 1/(1 + p*z),
# z >= 0, max abs error ~1.5e-7 (float32 precision).  exp (and the reciprocal)
# go to the EUP; the polynomial is ~10 VPU ops instead of lax.erf's ~25-30.
_AS_P = 0.3275911
_AS_A1 = 0.254829592
_AS_A2 = -0.284496736
_AS_A3 = 1.421413741
_AS_A4 = -1.453152027
_AS_A5 = 1.061405429


def _erf_via_exp(z):
    """float32 erf with the transcendental on the EUP; |err| <= ~1.5e-7."""
    az = jnp.abs(z)
    t = 1.0 / (1.0 + _AS_P * az)
    poly = ((((_AS_A5 * t + _AS_A4) * t + _AS_A3) * t + _AS_A2) * t + _AS_A1) * t
    e = jnp.exp(-(az * az))                      # EUP exp
    r = 1.0 - poly * e
    return jnp.where(z < 0.0, -r, r)


def _gelu_f32(xf):
    """Exact-erf GELU formula (torch default), erf computed via _erf_via_exp."""
    return 0.5 * xf * (1.0 + _erf_via_exp(xf * _INV_SQRT2))


def _gelu_kernel(x_ref, o_ref):
    xf = x_ref[...].astype(jnp.float32)          # f32 math regardless of storage dtype
    o_ref[...] = _gelu_f32(xf).astype(o_ref.dtype)


# ---------------------------------------------------------------------------
# Tiling policy
# ---------------------------------------------------------------------------
_MAX_COLS = 4096                      # widest lane-dense slab width we try
_SINGLE_BLOCK_ELEMS = 128 * 1024      # 512 KiB f32-eq: above this, always pipeline
_AWKWARD_SINGLE_MAX_ELEMS = 32 * 1024 # cap for the zero-copy (1, n) block (n%128 != 0)
_VMEM_LIMIT_BYTES = 48 * 1024 * 1024  # safe on v5e/v6e (128 MiB phys) and v7x (64 MiB)

_BLOCK_ELEMS_CACHE = [None]


def _target_block_elems():
    """~4 MiB f32-equivalent per block; ~6 MiB on v7x (faster HBM amortizes the
    ~0.35 us per-grid-step overhead; 2(in)+2(out) buffers + f32 temporaries stay
    well under the 48 MiB scoped limit on every generation)."""
    if _BLOCK_ELEMS_CACHE[0] is None:
        elems = (4 * 1024 * 1024) // 4
        try:
            info = pltpu.get_tpu_info()
            vmem = int(getattr(info, "vmem_capacity_bytes", 0) or 0)
            if vmem and vmem <= 64 * 1024 * 1024:      # v7x: 64 MiB per TensorCore
                elems = (6 * 1024 * 1024) // 4
        except Exception:
            pass
        _BLOCK_ELEMS_CACHE[0] = elems
    return _BLOCK_ELEMS_CACHE[0]


def _pick_cols(n):
    """Largest multiple of 128 (<= _MAX_COLS) dividing n, or None."""
    if n % 128 != 0:
        return None
    for c in range(min(_MAX_COLS, n), 0, -128):
        if n % c == 0:
            return c
    return 128  # unreachable: 128 always divides n here


def _cost_estimate(n, itemsize):
    # Advisory only: ~20 VPU ops + 2 EUP ops per element, streaming in+out.
    return pl.CostEstimate(flops=20 * n, transcendentals=2 * n,
                           bytes_accessed=2 * n * itemsize)


def _single_block_call(x2, donate):
    rows, cols = x2.shape
    n = rows * cols
    kwargs = {"input_output_aliases": {0: 0}} if donate else {}
    return pl.pallas_call(
        _gelu_kernel,
        out_shape=jax.ShapeDtypeStruct((rows, cols), x2.dtype),
        in_specs=[pl.BlockSpec((rows, cols), lambda: (0, 0))],
        out_specs=pl.BlockSpec((rows, cols), lambda: (0, 0)),
        cost_estimate=_cost_estimate(n, int(jnp.dtype(x2.dtype).itemsize)),
        **kwargs,
    )(x2)


def _tiled_call(x2, donate):
    rows, cols = x2.shape
    n = rows * cols
    # f32-equivalent block sizing (independent of storage dtype): the in-kernel
    # f32 upcast temporaries are what actually bound VMEM for bf16/fp16 inputs.
    tgt = max(8, (_target_block_elems() // cols) // 8 * 8)
    if rows <= 8:
        row_tile = rows
    else:
        # Keep at least ~4 grid steps so mid-sized arrays still get pipelined
        # (and both v7x TensorCores get work); ragged last block is clipped by
        # Pallas.
        quarter = max(8, (rows // 4) // 8 * 8)
        row_tile = max(8, min(tgt, quarter, (rows // 8) * 8))
    grid = (pl.cdiv(rows, row_tile),)
    kwargs = {"input_output_aliases": {0: 0}} if donate else {}
    return pl.pallas_call(
        _gelu_kernel,
        out_shape=jax.ShapeDtypeStruct((rows, cols), x2.dtype),
        grid_spec=pltpu.PrefetchScalarGridSpec(
            num_scalar_prefetch=0,
            grid=grid,
            in_specs=[pl.BlockSpec((row_tile, cols), lambda i: (i, 0))],
            out_specs=pl.BlockSpec((row_tile, cols), lambda i: (i, 0)),
        ),
        compiler_params=pltpu.CompilerParams(
            # TODO(synk): verify "parallel" actually shards the 1-D grid across
            # v7x's two TensorCores; switch to CORE_PARALLEL if it does not.
            dimension_semantics=("parallel",),
            vmem_limit_bytes=_VMEM_LIMIT_BYTES,
        ),
        cost_estimate=_cost_estimate(n, int(jnp.dtype(x2.dtype).itemsize)),
        **kwargs,
    )(x2)


def _gelu_flat(flat, donate):
    n = flat.shape[0]
    cols = _pick_cols(n)
    if cols is None:
        # n not a multiple of 128 (rare for NCHW feature maps).
        if n <= _AWKWARD_SINGLE_MAX_ELEMS:
            # Block == full array dims, so the (8,128) rule does not apply:
            # zero-copy, no padding, masked stores only at the ragged lane edge.
            return _single_block_call(flat.reshape(1, n), donate).reshape(-1)
        # Large & awkward: 128-aligned prefix through the tiled kernel, <128-elem
        # tail via the same formula in plain JAX, one concatenate to stitch.
        # TODO(synk): a manual-DMA ragged kernel would remove this stitch copy.
        n_main = (n // 128) * 128
        main = _gelu_flat(flat[:n_main], donate=False)
        tail = _gelu_f32(flat[n_main:].astype(jnp.float32)).astype(flat.dtype)
        return jnp.concatenate([main, tail])
    rows = n // cols
    x2 = flat.reshape(rows, cols)
    if n <= _SINGLE_BLOCK_ELEMS:
        return _single_block_call(x2, donate).reshape(-1)
    return _tiled_call(x2, donate).reshape(-1)


def gelu_pallas(x: jax.Array, *, donate: bool = False) -> jax.Array:
    """Elementwise GELU (torch.nn.GELU() default semantics) via Pallas on TPU.

    Set donate=True only if the caller actually donates x's buffer (same shape
    and dtype); it aliases the input HBM buffer to the output.
    """
    orig_shape = x.shape
    n = x.size
    if n == 0:
        return x
    out_flat = _gelu_flat(x.reshape(-1), donate)
    return out_flat.reshape(orig_shape)


if __name__ == "__main__":
    key = jax.random.PRNGKey(0)
    k1, k2, k3, k4 = jax.random.split(key, 4)

    def ref_gelu(v):
        return jax.nn.gelu(v.astype(jnp.float32), approximate=False).astype(v.dtype)

    # 1) Small NCHW input (single-block path), matching the module's typical use.
    x = jax.random.normal(k1, (2, 4, 16, 16), dtype=jnp.float32)
    out = jax.block_until_ready(gelu_pallas(x))
    assert out.shape == x.shape and out.dtype == x.dtype
    assert float(jnp.max(jnp.abs(out - ref_gelu(x)))) < 5e-6

    # 2) Larger input -> tiled, double-buffered grid path (>= 4 blocks).
    xl = jax.random.normal(k2, (4, 8, 256, 256), dtype=jnp.float32)
    outl = jax.block_until_ready(gelu_pallas(xl))
    assert float(jnp.max(jnp.abs(outl - ref_gelu(xl)))) < 5e-6

    # 3) Ragged last grid block (rows not a multiple of the row tile).
    xr = jax.random.normal(k3, (3, 5, 96, 128), dtype=jnp.float32)
    outr = jax.block_until_ready(gelu_pallas(xr))
    assert float(jnp.max(jnp.abs(outr - ref_gelu(xr)))) < 5e-6

    # 4) bf16 storage, f32 in-kernel math (bf16 quantization dominates the diff).
    xb = jax.random.normal(k4, (2, 4, 16, 16), dtype=jnp.bfloat16)
    outb = jax.block_until_ready(gelu_pallas(xb))
    assert outb.dtype == jnp.bfloat16
    assert float(jnp.max(jnp.abs(outb.astype(jnp.float32)
                                 - ref_gelu(xb).astype(jnp.float32)))) < 5e-2

    # 5) Element count not divisible by 128 -> zero-copy (1, n) full-array block.
    xa = jax.random.normal(k1, (7, 11, 3), dtype=jnp.float32)
    outa = jax.block_until_ready(gelu_pallas(xa))
    assert float(jnp.max(jnp.abs(outa - ref_gelu(xa)))) < 5e-6

    print("KERNEL_OK")
</pallas_src>

<mosaic_0001>
module attributes {stable_mosaic.version = 11 : i64} {
  func.func @_gelu_kernel(%arg0: memref<1x2048xf32, #tpu.memory_space<vmem>>, %arg1: memref<1x2048xf32, #tpu.memory_space<vmem>>) attributes {dimension_semantics = [], scalar_prefetch = 0 : i64, scratch_operands = 0 : i64, tpu.core_type = #tpu.core_type<tc>} {
    %c0 = arith.constant 0 : index
    %c0_0 = arith.constant 0 : index
    %0 = vector.load %arg0[%c0, %c0_0] : memref<1x2048xf32, #tpu.memory_space<vmem>>, vector<1x2048xf32>
    %cst = arith.constant 5.000000e-01 : f32
    %1 = vector.broadcast %cst : f32 to vector<1x2048xf32>
    %2 = arith.mulf %1, %0 : vector<1x2048xf32>
    %cst_1 = arith.constant 0.707106769 : f32
    %3 = vector.broadcast %cst_1 : f32 to vector<1x2048xf32>
    %4 = arith.mulf %0, %3 : vector<1x2048xf32>
    %5 = math.absf %4 : vector<1x2048xf32>
    %cst_2 = arith.constant 0.327591091 : f32
    %6 = vector.broadcast %cst_2 : f32 to vector<1x2048xf32>
    %7 = arith.mulf %6, %5 : vector<1x2048xf32>
    %cst_3 = arith.constant 1.000000e+00 : f32
    %8 = vector.broadcast %cst_3 : f32 to vector<1x2048xf32>
    %9 = arith.addf %8, %7 : vector<1x2048xf32>
    %cst_4 = arith.constant 1.000000e+00 : f32
    %10 = vector.broadcast %cst_4 : f32 to vector<1x2048xf32>
    %11 = arith.divf %10, %9 : vector<1x2048xf32>
    %cst_5 = arith.constant 1.06140542 : f32
    %12 = vector.broadcast %cst_5 : f32 to vector<1x2048xf32>
    %13 = arith.mulf %12, %11 : vector<1x2048xf32>
    %cst_6 = arith.constant -1.45315206 : f32
    %14 = vector.broadcast %cst_6 : f32 to vector<1x2048xf32>
    %15 = arith.addf %13, %14 : vector<1x2048xf32>
    %16 = arith.mulf %15, %11 : vector<1x2048xf32>
    %cst_7 = arith.constant 1.42141378 : f32
    %17 = vector.broadcast %cst_7 : f32 to vector<1x2048xf32>
    %18 = arith.addf %16, %17 : vector<1x2048xf32>
    %19 = arith.mulf %18, %11 : vector<1x2048xf32>
    %cst_8 = arith.constant -0.284496725 : f32
    %20 = vector.broadcast %cst_8 : f32 to vector<1x2048xf32>
    %21 = arith.addf %19, %20 : vector<1x2048xf32>
    %22 = arith.mulf %21, %11 : vector<1x2048xf32>
    %cst_9 = arith.constant 0.254829586 : f32
    %23 = vector.broadcast %cst_9 : f32 to vector<1x2048xf32>
    %24 = arith.addf %22, %23 : vector<1x2048xf32>
    %25 = arith.mulf %24, %11 : vector<1x2048xf32>
    %26 = arith.mulf %5, %5 : vector<1x2048xf32>
    %cst_10 = arith.constant 0.000000e+00 : f32
    %27 = vector.broadcast %cst_10 : f32 to vector<1x2048xf32>
    %28 = arith.subf %27, %26 : vector<1x2048xf32>
    %29 = math.exp %28 : vector<1x2048xf32>
    %30 = arith.mulf %25, %29 : vector<1x2048xf32>
    %cst_11 = arith.constant 1.000000e+00 : f32
    %31 = vector.broadcast %cst_11 : f32 to vector<1x2048xf32>
    %32 = arith.subf %31, %30 : vector<1x2048xf32>
    %cst_12 = arith.constant 0.000000e+00 : f32
    %33 = vector.broadcast %cst_12 : f32 to vector<1x2048xf32>
    %34 = arith.cmpf olt, %4, %33 : vector<1x2048xf32>
    %cst_13 = arith.constant 0.000000e+00 : f32
    %35 = vector.broadcast %cst_13 : f32 to vector<1x2048xf32>
    %36 = arith.subf %35, %32 : vector<1x2048xf32>
    %37 = arith.select %34, %36, %32 : vector<1x2048xi1>, vector<1x2048xf32>
    %cst_14 = arith.constant 1.000000e+00 : f32
    %38 = vector.broadcast %cst_14 : f32 to vector<1x2048xf32>
    %39 = arith.addf %38, %37 : vector<1x2048xf32>
    %40 = arith.mulf %2, %39 : vector<1x2048xf32>
    %c0_15 = arith.constant 0 : index
    %c0_16 = arith.constant 0 : index
    %41 = vector.load %arg1[%c0_15, %c0_16] : memref<1x2048xf32, #tpu.memory_space<vmem>>, vector<1x2048xf32>
    tpu.vector_store %arg1[%c0_15, %c0_16], %40 {strides = array<i32>} : memref<1x2048xf32, #tpu.memory_space<vmem>>, vector<1x2048xf32>,
    return
  }
}

</mosaic_0001>

<bundles_post_ra>
// kernel: tpu_custom_call.1
= control target key start
LH: loop header
LB: loop body
LE: loop exit
PB: predicated region body
PF: predicated region fallthrough
CT: control target
= control target key end

     0   :  { %6 = vsyncpa [#allocation3], 0  ;;  %s188_s0 = inlined_call_operand.hbm [shape: f32[1,2048], index: 0, kind: input, shape index: {}]   ;;  %s189_s1 = inlined_call_operand.hbm [shape: f32[1,2048], index: 1, kind: output, shape index: {}]  }
   0x1   :  { %7 = vsyncpa [#allocation4], 0  ;;  %s152_s6 = smov [#allocation2]   ;;  %s104_s10 = scalar_lea.hbm %s188_s0, 256 }
   0x2   :  { %s14_s7 = sshll.u32 %s152_s6, 4  ;;  %p105_p0 = scmp.ne.s32.totalorder %s188_s0, %s104_s10  ;;  %s15_s7 = int_to_ptr.vmem [resolvable:$true] %s14_s7 }
   0x3   :  { %p108_p1 = scmp.lt.u32.totalorder %s104_s10, %s188_s0 }
   0x5   :  { %p110_p2 = pnand %p108_p1, %p105_p0 }
   0x7   :  { %113 = shalt.err (!%p110_p2)
}
   0x8   :  { %s114_s15 = scalar_lea.vmem %s15_s7, 256  ;;  %p119_p4 = scmp.lt.s32.totalorder %s15_s7, %s15_s7 }
   0x9   :  { %p115_p3 = scmp.ne.s32.totalorder %s15_s7, %s114_s15  ;;  %p120_p5 = scmp.lt.s32.totalorder %s114_s15, %s114_s15 }
   0xb   :  { %p121_p6 = por %p120_p5, %p119_p4 }
   0xd   :  { %p122_p7 = pnand %p121_p6, %p115_p3 }
   0xf   :  { %125 = shalt.err (!%p122_p7)
}
  0x10   :  { %17 = dma.hbm_to_vmem [thread:$0]  %s188_s0, 256, %s15_s7, [#allocation3]  }
  0x11   :  { %148 = dma.done.wait [#allocation3], 256  }
  0x12   :  { %149 = vsyncadd [#allocation3], 4294967040  ;;  %v21_v0 = vld [vmem:[#allocation2] sm:$0xff]  ;;  %v22_v1 = vld [vmem:[#allocation2 + $0x8] sm:$0xff]  ;;  %s153_s0 = smov [#allocation5]  }
  0x13   :  { %v25_v2 = vmul.f32 0.70710677, %v21_v0  ;;  %v26_v3 = vmul.f32 0.70710677, %v22_v1  ;;  %v23_v43 = vmul.f32 0.5, %v21_v0  ;;  %v24_v46 = vmul.f32 0.5, %v22_v1 }
  0x14   :  { %s85_s18 = sshll.u32 %s153_s0, 4  ;;  %s86_s18 = int_to_ptr.vmem [resolvable:$true] %s85_s18 }
  0x15   :  { %v27_v4 = vand.u32 2147483647, %v25_v2  ;;  %v28_v5 = vand.u32 2147483647, %v26_v3  ;;  %vm67_vm0 = vcmp.lt.f32.partialorder %v25_v2, 0.0  ;;  %vm68_vm1 = vcmp.lt.f32.partialorder %v26_v3, 0.0  ;;  %p131_p9 = scmp.lt.s32.totalorder %s86_s18, %s86_s18 }
  0x16   :  { %s126_s19 = scalar_lea.vmem %s86_s18, 256 }
  0x17   :  { %v29_v6 = vmul.f32 0.3275911, %v27_v4  ;;  %v30_v7 = vmul.f32 0.3275911, %v28_v5  ;;  %v55_v10 = vmul.f32 %v27_v4, %v27_v4  ;;  %v56_v11 = vmul.f32 %v28_v5, %v28_v5  ;;  %p127_p8 = scmp.ne.s32.totalorder %s86_s18, %s126_s19  ;;  %p132_p10 = scmp.lt.s32.totalorder %s126_s19, %s126_s19 }
  0x19   :  { %v31_v8 = vadd.f32 1.0, %v29_v6  ;;  %v32_v9 = vadd.f32 1.0, %v30_v7  ;;  %v57_v12 = vsub.f32 0.0, %v55_v10  ;;  %v58_v13 = vsub.f32 0.0, %v56_v11  ;;  %p133_p11 = por %p132_p10, %p131_p9 }
  0x1b   :  { %96 = vrcp.f32 %v31_v8  ;;  %v59_v17 = vmul.f32 1.442695, %v57_v12  ;;  %v61_v20 = vmul.f32 1.442695, %v58_v13  ;;  %p134_p12 = pnand %p133_p11, %p127_p8 }
  0x1c   :  { %98 = vrcp.f32 %v32_v9 }
  0x1d   :  { %100 = vpow2.f32 %v59_v17 }
  0x1e   :  { %102 = vpow2.f32 %v61_v20 }
  0x25   :  { %v97_v14 = vpop.eup %96 }
  0x26   :  { %v99_v15 = vpop.eup %98  ;;  %v37_v16 = vmul.f32 1.0614054, %v97_v14 }
  0x27   :  { %v38_v18 = vmul.f32 1.0614054, %v99_v15  ;;  %v101_v33 = vpop.eup %100 }
  0x28   :  { %v39_v19 = vadd.f32 -1.4531521, %v37_v16  ;;  %v103_v35 = vpop.eup %102 }
  0x29   :  { %v40_v21 = vadd.f32 -1.4531521, %v38_v18 }
  0x2a   :  { %v41_v22 = vmul.f32 %v97_v14, %v39_v19 }
  0x2b   :  { %v42_v23 = vmul.f32 %v99_v15, %v40_v21 }
  0x2c   :  { %v43_v24 = vadd.f32 1.4214138, %v41_v22 }
  0x2d   :  { %v44_v25 = vadd.f32 1.4214138, %v42_v23 }
  0x2e   :  { %v45_v26 = vmul.f32 %v97_v14, %v43_v24 }
  0x2f   :  { %v46_v27 = vmul.f32 %v99_v15, %v44_v25 }
  0x30   :  { %v47_v28 = vadd.f32 -0.28449672, %v45_v26 }
  0x31   :  { %v48_v29 = vadd.f32 -0.28449672, %v46_v27 }
  0x32   :  { %v49_v30 = vmul.f32 %v97_v14, %v47_v28 }
  0x33   :  { %v50_v31 = vmul.f32 %v99_v15, %v48_v29 }
  0x34   :  { %v51_v32 = vadd.f32 0.2548296, %v49_v30 }
  0x35   :  { %v52_v34 = vadd.f32 0.2548296, %v50_v31 }
  0x36   :  { %v53_v36 = vmul.f32 %v97_v14, %v51_v32 }
  0x37   :  { %v54_v37 = vmul.f32 %v99_v15, %v52_v34 }
  0x38   :  { %v63_v38 = vmul.f32 %v101_v33, %v53_v36 }
  0x39   :  { %v64_v39 = vmul.f32 %v103_v35, %v54_v37 }
  0x3a   :  { %v65_v40 = vsub.f32 1.0, %v63_v38 }
  0x3b   :  { %v66_v41 = vsub.f32 1.0, %v64_v39 }
  0x3c   :  { %v69_v42 = vsub.f32 0.0, %v65_v40 }
  0x3d   :  { %v70_v44 = vsub.f32 0.0, %v66_v41 }
  0x3e   :  { %v71_v45 = vsel %vm67_vm0, %v69_v42, %v65_v40 }
  0x3f   :  { %v73_v47 = vadd.f32 1.0, %v71_v45  ;;  %v72_v48 = vsel %vm68_vm1, %v70_v44, %v66_v41 }
  0x40   :  { %v74_v49 = vadd.f32 1.0, %v72_v48 }
  0x41   :  { %v75_v50 = vmul.f32 %v73_v47, %v23_v43 }
  0x42   :  { %v76_v51 = vmul.f32 %v74_v49, %v24_v46 }
  0x43   :  { %77 = vst [vmem:[#allocation5] sm:$0xff] %v75_v50 }
  0x44   :  { %78 = vst [vmem:[#allocation5 + $0x8] sm:$0xff] %v76_v51 }
  0x45   :  { %137 = shalt.err (!%p134_p12)
}
  0x46   :  { %s138_s22 = scalar_lea.hbm %s189_s1, 256 }
  0x47   :  { %p139_p13 = scmp.ne.s32.totalorder %s189_s1, %s138_s22  ;;  %p142_p0 = scmp.lt.u32.totalorder %s138_s22, %s189_s1 }
  0x49   :  { %p144_p1 = pnand %p142_p0, %p139_p13 }
  0x4b   :  { %147 = shalt.err (!%p144_p1)
}
  0x4c   :  { %88 = dma.vmem_to_hbm [thread:$0]  %s86_s18, 256, %s189_s1, [#allocation4]  }
  0x4d   :  { %150 = dma.done.wait [#allocation4], 256  }
  0x4e   :  { %151 = vsyncadd [#allocation4], 4294967040 }
  0x4f   :  { %92 = vsyncpa [#allocation3], 1 }
  0x50   :  { %93 = vsyncpa [#allocation4], 1 }

</bundles_post_ra>
